<compile_context>
chip_gen: v7x
topology: tpu7x:2x2x1
jax: 0.10.0
libtpu: 0.0.40
codegen_flags: <defaults>
</compile_context>

<pallas_src>
import functools

import jax
import jax.numpy as jnp
from jax.experimental import pallas as pl
from jax.experimental.pallas import tpu as pltpu

LANES = 128  # lane-dense output slab width


def _round_up(x, m):
    return ((x + m - 1) // m) * m


def _vmem_capacity_bytes():
    """Generation-aware VMEM capacity (falls back to the v7x 64 MiB value)."""
    try:
        return int(pltpu.get_tpu_info().vmem_capacity_bytes)
    except Exception:
        return 64 * 1024 * 1024


# ----------------------------- Pallas kernel --------------------------------
def _gnn_critic_kernel(obs_ref,
                       gw0_ref, gw1_ref, gw2_ref,          # GNN layer weights
                       w0_ref, b0_ref,                     # MLP linear 0 (flattened, node-padded)
                       w1_ref, b1_ref,                     # MLP linear 1
                       w2_row_ref, b2_ref,                 # MLP linear 2 (row vec + SMEM scalar)
                       out_ref,
                       *, node_num, pad_node, feat_dim, compute_dtype):
    cd = compute_dtype
    N, Np, F = node_num, pad_node, feat_dim

    # --- in-kernel split / cast / node-dim pad (single HBM pass for obs) ---
    obs = obs_ref[...].astype(cd)                          # (TB, N, N+F)
    TB = obs.shape[0]
    if Np > N:
        # Zero-pad node rows up to the sublane tile: makes the reshapes below
        # layout-preserving and is mathematically exact (zeros stay zeros).
        obs = jnp.concatenate(
            [obs, jnp.zeros((TB, Np - N, N + F), cd)], axis=1)
    A = obs[:, :, :N]                                      # (TB, Np, N)
    if Np > N:
        A = jnp.concatenate(
            [A, jnp.zeros((TB, Np, Np - N), cd)], axis=2)  # (TB, Np, Np)
    H = obs[:, :, N:]                                      # (TB, Np, F)

    # ---- GNN layers: H = relu(A @ (H @ W)) ----
    for gw_ref in (gw0_ref, gw1_ref, gw2_ref):
        W = gw_ref[...]                                    # (f_in, f_out)
        f_in, f_out = W.shape
        # Shared-weight matmul with batch folded into rows; the collapse is a
        # free (layout-preserving) reshape because Np is sublane-tile aligned.
        S = jnp.dot(H.reshape(TB * Np, f_in), W,
                    preferred_element_type=jnp.float32)
        S = S.reshape(TB, Np, f_out).astype(cd)
        # Batched neighbourhood aggregation (MXU, f32 accumulation).
        Hf = jnp.einsum('bnm,bmh->bnh', A, S,
                        preferred_element_type=jnp.float32)
        H = jnp.maximum(Hf, 0.0).astype(cd)                # relu in f32, keep cd

    # ---- value MLP ----
    # Linear0 consumes the flattened (n-major, f-minor) embedding with a
    # single deep-K MXU matmul against w0_flat (Np*F, h0).
    if F % LANES == 0:
        emb = H.reshape(TB, Np * F)                        # lane-aligned: free
    else:
        # Layout-safe lane-merge flatten: per-node rows concatenated along
        # lanes (only cheap slices/concats; zero padded rows contribute 0).
        emb = jnp.concatenate([H[:, n, :] for n in range(Np)], axis=-1)
    x = jnp.tanh(jnp.dot(emb, w0_ref[...],
                         preferred_element_type=jnp.float32) + b0_ref[...])

    # Linear1 + tanh.
    x = jnp.tanh(jnp.dot(x.astype(cd), w1_ref[...],
                         preferred_element_type=jnp.float32) + b1_ref[...])

    # Final Linear has a single output column: VPU multiply + lane reduction
    # instead of a 1-column (mostly padding) MXU matmul. Bias is an SMEM scalar.
    v = jnp.sum(x * w2_row_ref[...], axis=-1, keepdims=True) + b2_ref[0, 0]

    # Lane-dense output slab (unmasked stores); wrapper reads column 0.
    out_ref[...] = jnp.broadcast_to(v, out_ref.shape).astype(out_ref.dtype)


# ------------------------------- wrapper -------------------------------------
@functools.partial(jax.jit,
                   static_argnames=("node_num", "feature_dim",
                                    "compute_dtype", "batch_tile"))
def gnn_critic_forward(obs, params, *, node_num, feature_dim,
                       compute_dtype=jnp.bfloat16, batch_tile=None):
    """obs: (B, N, N+F) float32. Returns the critic value, shape (B,)."""
    B = obs.shape[0]
    N, F = node_num, feature_dim
    cd = jnp.dtype(compute_dtype)
    itm = cd.itemsize

    hs = params['gw0'].shape[1]
    h0 = params['mw0'].shape[1]
    h1 = params['mw1'].shape[1]

    # Pad the node dim to the compute-dtype sublane tile (8 f32 / 16 bf16) so
    # in-kernel (TB, Np, f) <-> (TB*Np, f) collapses are layout-preserving.
    sub = 8 * max(1, 4 // itm)
    Np = _round_up(N, sub)

    # --- wrapper-side weight layout plumbing (tiny; fused by XLA) ---
    gw0 = params['gw0'].astype(cd)
    gw1 = params['gw1'].astype(cd)
    gw2 = params['gw2'].astype(cd)
    w0_3d = params['mw0'].reshape(N, F, h0)
    if Np > N:
        w0_3d = jnp.pad(w0_3d, ((0, Np - N), (0, 0), (0, 0)))
    w0_flat = w0_3d.reshape(Np * F, h0).astype(cd)            # node-padded Linear0
    b0 = params['mb0'].astype(jnp.float32)                    # (1, h0)
    w1 = params['mw1'].astype(cd)                             # (h0, h1)
    b1 = params['mb1'].astype(jnp.float32)                    # (1, h1)
    w2_row = params['mw2'].reshape(1, h1).astype(jnp.float32) # VPU path -> keep f32
    b2 = params['mb2'].reshape(1, 1).astype(jnp.float32)      # SMEM scalar

    weight_args = (gw0, gw1, gw2, w0_flat, b0, w1, b1, w2_row)
    weight_bytes = sum(int(a.size) * a.dtype.itemsize for a in weight_args)
    # TODO(synk): if Np*F*h0 ever makes w0_flat multi-MiB, stream it over an
    # extra 'arbitrary' grid axis instead of keeping it fully VMEM-resident.

    # --- generation-aware VMEM budget & batch tile ---
    vmem_cap = _vmem_capacity_bytes()                         # 64 MiB v7x / 128 MiB v5e,v6e
    vmem_limit = max(32 << 20, min(int(0.75 * vmem_cap), 96 << 20))

    if batch_tile is None:
        max_f = max(F, hs)
        per_sample = 2 * N * (N + F) * 4                      # double-buffered obs tile (f32)
        per_sample += (Np * Np + 2 * Np * max_f) * (4 + itm)  # A / support / H live values
        per_sample += (Np * F + 2 * (h0 + h1) + LANES) * 4    # emb + MLP activations + out row
        budget = max(4 << 20, vmem_limit - 2 * weight_bytes - (4 << 20))
        tb = max(8, min(1024, (budget // per_sample) // 8 * 8))
        # Megacore (v7x): prefer >= 2 grid steps so both TensorCores get work.
        tb = min(tb, max(8, _round_up(-(-B // 2), 8)))
    else:
        tb = max(8, _round_up(int(batch_tile), 8))

    if tb >= B:
        TB, B_pad = B, B                                      # single full-batch tile
    else:
        TB = tb                                               # multiple of 8 (block constraint)
        B_pad = _round_up(B, TB)

    obs_in = obs
    if B_pad != B:
        # Zero-pad the batch so the last tile never computes on stale VMEM
        # rows; padded rows give finite values and are discarded below.
        obs_in = jnp.pad(obs, ((0, B_pad - B), (0, 0), (0, 0)))

    grid = (B_pad // TB,)

    def _const_spec(shape):
        nd = len(shape)
        return pl.BlockSpec(shape, lambda i, _nd=nd: (0,) * _nd)

    in_specs = [
        pl.BlockSpec((TB, N, N + F), lambda i: (i, 0, 0)),    # obs tiles (pipelined)
        _const_spec(gw0.shape), _const_spec(gw1.shape), _const_spec(gw2.shape),
        _const_spec(w0_flat.shape), _const_spec(b0.shape),
        _const_spec(w1.shape), _const_spec(b1.shape),
        _const_spec(w2_row.shape),
        pl.BlockSpec(memory_space=pltpu.MemorySpace.SMEM),    # b2 scalar
    ]
    out_specs = pl.BlockSpec((TB, LANES), lambda i: (i, 0))

    # Advisory cost estimate for XLA's scheduler.
    flops = 0
    for f_in, f_out in ((F, hs), (hs, hs), (hs, F)):
        flops += 2 * B_pad * Np * f_in * f_out + 2 * B_pad * Np * Np * f_out
    flops += 2 * B_pad * (Np * F * h0 + h0 * h1 + h1)
    bytes_accessed = (int(obs_in.size) * 4 + weight_bytes
                      + int(b2.size) * 4 + B_pad * LANES * 4)

    kernel = functools.partial(_gnn_critic_kernel, node_num=N, pad_node=Np,
                               feat_dim=F, compute_dtype=cd)

    out = pl.pallas_call(
        kernel,
        out_shape=jax.ShapeDtypeStruct((B_pad, LANES), jnp.float32),
        grid=grid,
        in_specs=in_specs,
        out_specs=out_specs,
        compiler_params=pltpu.CompilerParams(
            dimension_semantics=("parallel",),
            vmem_limit_bytes=vmem_limit),
        cost_estimate=pl.CostEstimate(flops=flops,
                                      transcendentals=B_pad * (h0 + h1),
                                      bytes_accessed=bytes_accessed),
    )(obs_in, gw0, gw1, gw2, w0_flat, b0, w1, b1, w2_row, b2)

    return out[:B, 0]                                         # torch.squeeze(value, -1)


# --------------------------- parameter init -----------------------------------
def xavier_uniform(key, shape):
    fan_in, fan_out = shape
    bound = jnp.sqrt(6.0 / (fan_in + fan_out))
    return jax.random.uniform(key, shape, jnp.float32, -bound, bound)


def linear_init(key, in_dim, out_dim):
    kw, kb = jax.random.split(key)
    bound = 1.0 / jnp.sqrt(in_dim)
    w = jax.random.uniform(kw, (in_dim, out_dim), jnp.float32, -bound, bound)
    b = jax.random.uniform(kb, (1, out_dim), jnp.float32, -bound, bound)
    return w, b


def init_params(key, node_num, feature_dim, hidden_size, hidden_sizes):
    keys = jax.random.split(key, 6)
    # GNN with 3 layers: F->H, H->H, H->F
    gw0 = xavier_uniform(keys[0], (feature_dim, hidden_size))
    gw1 = xavier_uniform(keys[1], (hidden_size, hidden_size))
    gw2 = xavier_uniform(keys[2], (hidden_size, feature_dim))
    # value MLP: [N*F] + hidden_sizes + [1]
    sizes = [node_num * feature_dim] + list(hidden_sizes) + [1]
    mw0, mb0 = linear_init(keys[3], sizes[0], sizes[1])
    mw1, mb1 = linear_init(keys[4], sizes[1], sizes[2])
    mw2, mb2 = linear_init(keys[5], sizes[2], sizes[3])
    return dict(gw0=gw0, gw1=gw1, gw2=gw2,
                mw0=mw0, mb0=mb0, mw1=mw1, mb1=mb1, mw2=mw2, mb2=mb2)


# ---------------------------- pure-JAX reference -------------------------------
def reference_forward(obs, p, node_num, feature_dim, compute_dtype=jnp.float32):
    """Pure-JAX reference using the same operand-dtype policy as the kernel."""
    cd = compute_dtype
    A = obs[:, :, :node_num].astype(cd)
    H = obs[:, :, node_num:].astype(cd)
    for w in (p['gw0'], p['gw1'], p['gw2']):
        S = jnp.einsum('bnf,fh->bnh', H, w.astype(cd),
                       preferred_element_type=jnp.float32).astype(cd)
        H = jnp.einsum('bnm,bmh->bnh', A, S,
                       preferred_element_type=jnp.float32)
        H = jax.nn.relu(H).astype(cd)
    emb = H.reshape(H.shape[0], -1)
    x = jnp.tanh(jnp.dot(emb, p['mw0'].astype(cd),
                         preferred_element_type=jnp.float32) + p['mb0'])
    x = jnp.tanh(jnp.dot(x.astype(cd), p['mw1'].astype(cd),
                         preferred_element_type=jnp.float32) + p['mb1'])
    v = x @ p['mw2'] + p['mb2']
    return jnp.squeeze(v, -1)


# --------------------------------- main ---------------------------------------
if __name__ == "__main__":
    B, N, F, HID = 2, 8, 4, 16            # batch, node_num, feature_dim, hidden_size
    hidden_sizes = (32, 32)

    key = jax.random.PRNGKey(0)
    k_obs, k_par = jax.random.split(key)

    # obs = concat(A_adjust, H_features) along the last dim -> (B, N, N+F)
    obs = jax.random.uniform(k_obs, (B, N, N + F), jnp.float32)
    params = init_params(k_par, N, F, HID, hidden_sizes)

    # f32 compute path (exactness check against the pure-JAX reference).
    v32 = jax.block_until_ready(
        gnn_critic_forward(obs, params, node_num=N, feature_dim=F,
                           compute_dtype=jnp.float32))
    r32 = reference_forward(obs, params, N, F, jnp.float32)
    assert v32.shape == (B,)
    assert jnp.allclose(v32, r32, atol=1e-4, rtol=1e-4)

    # bf16 matmul operands / f32 accumulation (fast MXU path on v6e/v7x;
    # elementwise math stays f32, so the same kernel is also safe on v5e).
    # This path also exercises the node-dim padding (N=8 -> Np=16).
    vbf = jax.block_until_ready(
        gnn_critic_forward(obs, params, node_num=N, feature_dim=F,
                           compute_dtype=jnp.bfloat16))
    rbf = reference_forward(obs, params, N, F, jnp.bfloat16)
    assert vbf.shape == (B,)
    assert jnp.allclose(vbf, rbf, atol=5e-3, rtol=5e-3)

    print("KERNEL_OK")
</pallas_src>

<mosaic_0001>
module attributes {stable_mosaic.version = 11 : i64} {
  func.func @_gnn_critic_kernel(%arg0: i32, %arg1: memref<2x8x12xf32, #tpu.memory_space<vmem>>, %arg2: memref<4x16xf32, #tpu.memory_space<vmem>>, %arg3: memref<16x16xf32, #tpu.memory_space<vmem>>, %arg4: memref<16x4xf32, #tpu.memory_space<vmem>>, %arg5: memref<32x32xf32, #tpu.memory_space<vmem>>, %arg6: memref<1x32xf32, #tpu.memory_space<vmem>>, %arg7: memref<32x32xf32, #tpu.memory_space<vmem>>, %arg8: memref<1x32xf32, #tpu.memory_space<vmem>>, %arg9: memref<1x32xf32, #tpu.memory_space<vmem>>, %arg10: memref<1x1xf32, #tpu.memory_space<smem>>, %arg11: memref<2x128xf32, #tpu.memory_space<vmem>>) attributes {dimension_semantics = [#tpu.dimension_semantics<parallel>], iteration_bounds = array<i64: 1>, scalar_prefetch = 0 : i64, scratch_operands = 0 : i64, tpu.core_type = #tpu.core_type<tc>, window_params = [{transform_indices = @transform_0, window_bounds = array<i64: 2, 8, 12>}, {pipeline_mode = #tpu.pipeline_mode<synchronous>, transform_indices = @transform_1, window_bounds = array<i64: 4, 16>}, {pipeline_mode = #tpu.pipeline_mode<synchronous>, transform_indices = @transform_2, window_bounds = array<i64: 16, 16>}, {pipeline_mode = #tpu.pipeline_mode<synchronous>, transform_indices = @transform_3, window_bounds = array<i64: 16, 4>}, {pipeline_mode = #tpu.pipeline_mode<synchronous>, transform_indices = @transform_4, window_bounds = array<i64: 32, 32>}, {pipeline_mode = #tpu.pipeline_mode<synchronous>, transform_indices = @transform_5, window_bounds = array<i64: 1, 32>}, {pipeline_mode = #tpu.pipeline_mode<synchronous>, transform_indices = @transform_6, window_bounds = array<i64: 32, 32>}, {pipeline_mode = #tpu.pipeline_mode<synchronous>, transform_indices = @transform_7, window_bounds = array<i64: 1, 32>}, {pipeline_mode = #tpu.pipeline_mode<synchronous>, transform_indices = @transform_8, window_bounds = array<i64: 1, 32>}, {transform_indices = @transform_9, window_bounds = array<i64: 1, 1>}, {transform_indices = @transform_10, window_bounds = array<i64: 2, 128>}]} {
    %c0 = arith.constant 0 : index
    %c0_0 = arith.constant 0 : index
    %c0_1 = arith.constant 0 : index
    %0 = vector.load %arg1[%c0, %c0_0, %c0_1] : memref<2x8x12xf32, #tpu.memory_space<vmem>>, vector<2x8x12xf32>
    %1 = vector.extract_strided_slice %0 {offsets = [0, 0, 0], sizes = [2, 8, 8], strides = [1, 1, 1]} : vector<2x8x12xf32> to vector<2x8x8xf32>
    %2 = vector.extract_strided_slice %0 {offsets = [0, 0, 8], sizes = [2, 8, 4], strides = [1, 1, 1]} : vector<2x8x12xf32> to vector<2x8x4xf32>
    %c0_2 = arith.constant 0 : index
    %c0_3 = arith.constant 0 : index
    %3 = vector.load %arg2[%c0_2, %c0_3] : memref<4x16xf32, #tpu.memory_space<vmem>>, vector<4x16xf32>
    %4 = vector.shape_cast %2 : vector<2x8x4xf32> to vector<16x4xf32>
    %cst = arith.constant dense<0.000000e+00> : vector<16x16xf32>
    %5 = tpu.matmul %4, %3, %cst {dimension_numbers = #tpu.dot_dimension_numbers<[1], [0], [0], [1], [0, 0, 1, 1], [], []>} : vector<16x4xf32>, vector<4x16xf32>, vector<16x16xf32> -> vector<16x16xf32>
    %6 = vector.shape_cast %5 : vector<16x16xf32> to vector<2x8x16xf32>
    "tpu.trace_start"() <{level = 10 : i32, message = "bnm,bmh->bnh"}> : () -> ()
    %cst_4 = arith.constant dense<0.000000e+00> : vector<2x8x16xf32>
    %7 = tpu.matmul %1, %6, %cst_4 {dimension_numbers = #tpu.dot_dimension_numbers<[2], [1], [1], [2], [0, 0, 0, 1, 1, 2], [0], [0]>} : vector<2x8x8xf32>, vector<2x8x16xf32>, vector<2x8x16xf32> -> vector<2x8x16xf32>
    "tpu.trace_stop"() : () -> ()
    %cst_5 = arith.constant 0.000000e+00 : f32
    %8 = vector.broadcast %cst_5 : f32 to vector<2x8x16xf32>
    %9 = arith.maximumf %7, %8 : vector<2x8x16xf32>
    %c0_6 = arith.constant 0 : index
    %c0_7 = arith.constant 0 : index
    %10 = vector.load %arg3[%c0_6, %c0_7] : memref<16x16xf32, #tpu.memory_space<vmem>>, vector<16x16xf32>
    %11 = vector.shape_cast %9 : vector<2x8x16xf32> to vector<16x16xf32>
    %cst_8 = arith.constant dense<0.000000e+00> : vector<16x16xf32>
    %12 = tpu.matmul %11, %10, %cst_8 {dimension_numbers = #tpu.dot_dimension_numbers<[1], [0], [0], [1], [0, 0, 1, 1], [], []>} : vector<16x16xf32>, vector<16x16xf32>, vector<16x16xf32> -> vector<16x16xf32>
    %13 = vector.shape_cast %12 : vector<16x16xf32> to vector<2x8x16xf32>
    "tpu.trace_start"() <{level = 10 : i32, message = "bnm,bmh->bnh"}> : () -> ()
    %cst_9 = arith.constant dense<0.000000e+00> : vector<2x8x16xf32>
    %14 = tpu.matmul %1, %13, %cst_9 {dimension_numbers = #tpu.dot_dimension_numbers<[2], [1], [1], [2], [0, 0, 0, 1, 1, 2], [0], [0]>} : vector<2x8x8xf32>, vector<2x8x16xf32>, vector<2x8x16xf32> -> vector<2x8x16xf32>
    "tpu.trace_stop"() : () -> ()
    %cst_10 = arith.constant 0.000000e+00 : f32
    %15 = vector.broadcast %cst_10 : f32 to vector<2x8x16xf32>
    %16 = arith.maximumf %14, %15 : vector<2x8x16xf32>
    %c0_11 = arith.constant 0 : index
    %c0_12 = arith.constant 0 : index
    %17 = vector.load %arg4[%c0_11, %c0_12] : memref<16x4xf32, #tpu.memory_space<vmem>>, vector<16x4xf32>
    %18 = vector.shape_cast %16 : vector<2x8x16xf32> to vector<16x16xf32>
    %cst_13 = arith.constant dense<0.000000e+00> : vector<16x4xf32>
    %19 = tpu.matmul %18, %17, %cst_13 {dimension_numbers = #tpu.dot_dimension_numbers<[1], [0], [0], [1], [0, 0, 1, 1], [], []>} : vector<16x16xf32>, vector<16x4xf32>, vector<16x4xf32> -> vector<16x4xf32>
    %20 = vector.shape_cast %19 : vector<16x4xf32> to vector<2x8x4xf32>
    "tpu.trace_start"() <{level = 10 : i32, message = "bnm,bmh->bnh"}> : () -> ()
    %cst_14 = arith.constant dense<0.000000e+00> : vector<2x8x4xf32>
    %21 = tpu.matmul %1, %20, %cst_14 {dimension_numbers = #tpu.dot_dimension_numbers<[2], [1], [1], [2], [0, 0, 0, 1, 1, 2], [0], [0]>} : vector<2x8x8xf32>, vector<2x8x4xf32>, vector<2x8x4xf32> -> vector<2x8x4xf32>
    "tpu.trace_stop"() : () -> ()
    %cst_15 = arith.constant 0.000000e+00 : f32
    %22 = vector.broadcast %cst_15 : f32 to vector<2x8x4xf32>
    %23 = arith.maximumf %21, %22 : vector<2x8x4xf32>
    %24 = vector.extract_strided_slice %23 {offsets = [0, 0, 0], sizes = [2, 1, 4], strides = [1, 1, 1]} : vector<2x8x4xf32> to vector<2x1x4xf32>
    %25 = vector.shape_cast %24 : vector<2x1x4xf32> to vector<2x4xf32>
    %26 = vector.extract_strided_slice %23 {offsets = [0, 1, 0], sizes = [2, 1, 4], strides = [1, 1, 1]} : vector<2x8x4xf32> to vector<2x1x4xf32>
    %27 = vector.shape_cast %26 : vector<2x1x4xf32> to vector<2x4xf32>
    %28 = vector.extract_strided_slice %23 {offsets = [0, 2, 0], sizes = [2, 1, 4], strides = [1, 1, 1]} : vector<2x8x4xf32> to vector<2x1x4xf32>
    %29 = vector.shape_cast %28 : vector<2x1x4xf32> to vector<2x4xf32>
    %30 = vector.extract_strided_slice %23 {offsets = [0, 3, 0], sizes = [2, 1, 4], strides = [1, 1, 1]} : vector<2x8x4xf32> to vector<2x1x4xf32>
    %31 = vector.shape_cast %30 : vector<2x1x4xf32> to vector<2x4xf32>
    %32 = vector.extract_strided_slice %23 {offsets = [0, 4, 0], sizes = [2, 1, 4], strides = [1, 1, 1]} : vector<2x8x4xf32> to vector<2x1x4xf32>
    %33 = vector.shape_cast %32 : vector<2x1x4xf32> to vector<2x4xf32>
    %34 = vector.extract_strided_slice %23 {offsets = [0, 5, 0], sizes = [2, 1, 4], strides = [1, 1, 1]} : vector<2x8x4xf32> to vector<2x1x4xf32>
    %35 = vector.shape_cast %34 : vector<2x1x4xf32> to vector<2x4xf32>
    %36 = vector.extract_strided_slice %23 {offsets = [0, 6, 0], sizes = [2, 1, 4], strides = [1, 1, 1]} : vector<2x8x4xf32> to vector<2x1x4xf32>
    %37 = vector.shape_cast %36 : vector<2x1x4xf32> to vector<2x4xf32>
    %38 = vector.extract_strided_slice %23 {offsets = [0, 7, 0], sizes = [2, 1, 4], strides = [1, 1, 1]} : vector<2x8x4xf32> to vector<2x1x4xf32>
    %39 = vector.shape_cast %38 : vector<2x1x4xf32> to vector<2x4xf32>
    %40 = tpu.concatenate %25, %27, %29, %31, %33, %35, %37, %39 in 1 : vector<2x4xf32>, vector<2x4xf32>, vector<2x4xf32>, vector<2x4xf32>, vector<2x4xf32>, vector<2x4xf32>, vector<2x4xf32>, vector<2x4xf32> -> vector<2x32xf32>
    %c0_16 = arith.constant 0 : index
    %c0_17 = arith.constant 0 : index
    %41 = vector.load %arg5[%c0_16, %c0_17] : memref<32x32xf32, #tpu.memory_space<vmem>>, vector<32x32xf32>
    %cst_18 = arith.constant dense<0.000000e+00> : vector<2x32xf32>
    %42 = tpu.matmul %40, %41, %cst_18 {dimension_numbers = #tpu.dot_dimension_numbers<[1], [0], [0], [1], [0, 0, 1, 1], [], []>} : vector<2x32xf32>, vector<32x32xf32>, vector<2x32xf32> -> vector<2x32xf32>
    %c0_19 = arith.constant 0 : index
    %c0_20 = arith.constant 0 : index
    %43 = vector.load %arg6[%c0_19, %c0_20] : memref<1x32xf32, #tpu.memory_space<vmem>>, vector<1x32xf32>
    %44 = vector.broadcast %43 : vector<1x32xf32> to vector<2x32xf32>
    %45 = arith.addf %42, %44 : vector<2x32xf32>
    %46 = math.tanh %45 : vector<2x32xf32>
    %c0_21 = arith.constant 0 : index
    %c0_22 = arith.constant 0 : index
    %47 = vector.load %arg7[%c0_21, %c0_22] : memref<32x32xf32, #tpu.memory_space<vmem>>, vector<32x32xf32>
    %cst_23 = arith.constant dense<0.000000e+00> : vector<2x32xf32>
    %48 = tpu.matmul %46, %47, %cst_23 {dimension_numbers = #tpu.dot_dimension_numbers<[1], [0], [0], [1], [0, 0, 1, 1], [], []>} : vector<2x32xf32>, vector<32x32xf32>, vector<2x32xf32> -> vector<2x32xf32>
    %c0_24 = arith.constant 0 : index
    %c0_25 = arith.constant 0 : index
    %49 = vector.load %arg8[%c0_24, %c0_25] : memref<1x32xf32, #tpu.memory_space<vmem>>, vector<1x32xf32>
    %50 = vector.broadcast %49 : vector<1x32xf32> to vector<2x32xf32>
    %51 = arith.addf %48, %50 : vector<2x32xf32>
    %52 = math.tanh %51 : vector<2x32xf32>
    %c0_26 = arith.constant 0 : index
    %c0_27 = arith.constant 0 : index
    %53 = vector.load %arg9[%c0_26, %c0_27] : memref<1x32xf32, #tpu.memory_space<vmem>>, vector<1x32xf32>
    %54 = vector.broadcast %53 : vector<1x32xf32> to vector<2x32xf32>
    %55 = arith.mulf %52, %54 : vector<2x32xf32>
    %cst_28 = arith.constant dense<0.000000e+00> : vector<2xf32>
    %56 = vector.multi_reduction <add>, %55, %cst_28 [1] : vector<2x32xf32> to vector<2xf32>
    %57 = vector.shape_cast %56 : vector<2xf32> to vector<2x1xf32>
    %c0_29 = arith.constant 0 : index
    %c0_30 = arith.constant 0 : index
    %58 = memref.load %arg10[%c0_29, %c0_30] : memref<1x1xf32, #tpu.memory_space<smem>>
    %59 = vector.broadcast %58 : f32 to vector<2x1xf32>
    %60 = arith.addf %57, %59 : vector<2x1xf32>
    %61 = vector.shape_cast %60 : vector<2x1xf32> to vector<2x1xf32>
    %62 = vector.broadcast %61 : vector<2x1xf32> to vector<2x128xf32>
    %c0_31 = arith.constant 0 : index
    %c0_32 = arith.constant 0 : index
    %63 = vector.load %arg11[%c0_31, %c0_32] : memref<2x128xf32, #tpu.memory_space<vmem>>, vector<2x128xf32>
    tpu.vector_store %arg11[%c0_31, %c0_32], %62 {strides = array<i32>} : memref<2x128xf32, #tpu.memory_space<vmem>>, vector<2x128xf32>,
    return
  }
  func.func @transform_0(%arg0: i32) -> (i32, i32, i32) {
    %c0_i32 = arith.constant 0 : i32
    %c0_i32_0 = arith.constant 0 : i32
    %c0_i32_1 = arith.constant 0 : i32
    return %arg0, %c0_i32, %c0_i32_0 : i32, i32, i32
  }
  func.func @transform_1(%arg0: i32) -> (i32, i32) {
    %c0_i32 = arith.constant 0 : i32
    %c0_i32_0 = arith.constant 0 : i32
    %c0_i32_1 = arith.constant 0 : i32
    return %c0_i32, %c0_i32_0 : i32, i32
  }
  func.func @transform_2(%arg0: i32) -> (i32, i32) {
    %c0_i32 = arith.constant 0 : i32
    %c0_i32_0 = arith.constant 0 : i32
    %c0_i32_1 = arith.constant 0 : i32
    return %c0_i32, %c0_i32_0 : i32, i32
  }
  func.func @transform_3(%arg0: i32) -> (i32, i32) {
    %c0_i32 = arith.constant 0 : i32
    %c0_i32_0 = arith.constant 0 : i32
    %c0_i32_1 = arith.constant 0 : i32
    return %c0_i32, %c0_i32_0 : i32, i32
  }
  func.func @transform_4(%arg0: i32) -> (i32, i32) {
    %c0_i32 = arith.constant 0 : i32
    %c0_i32_0 = arith.constant 0 : i32
    %c0_i32_1 = arith.constant 0 : i32
    return %c0_i32, %c0_i32_0 : i32, i32
  }
  func.func @transform_5(%arg0: i32) -> (i32, i32) {
    %c0_i32 = arith.constant 0 : i32
    %c0_i32_0 = arith.constant 0 : i32
    %c0_i32_1 = arith.constant 0 : i32
    return %c0_i32, %c0_i32_0 : i32, i32
  }
  func.func @transform_6(%arg0: i32) -> (i32, i32) {
    %c0_i32 = arith.constant 0 : i32
    %c0_i32_0 = arith.constant 0 : i32
    %c0_i32_1 = arith.constant 0 : i32
    return %c0_i32, %c0_i32_0 : i32, i32
  }
  func.func @transform_7(%arg0: i32) -> (i32, i32) {
    %c0_i32 = arith.constant 0 : i32
    %c0_i32_0 = arith.constant 0 : i32
    %c0_i32_1 = arith.constant 0 : i32
    return %c0_i32, %c0_i32_0 : i32, i32
  }
  func.func @transform_8(%arg0: i32) -> (i32, i32) {
    %c0_i32 = arith.constant 0 : i32
    %c0_i32_0 = arith.constant 0 : i32
    %c0_i32_1 = arith.constant 0 : i32
    return %c0_i32, %c0_i32_0 : i32, i32
  }
  func.func @transform_9(%arg0: i32) -> (i32, i32) {
    %c0_i32 = arith.constant 0 : i32
    %c0_i32_0 = arith.constant 0 : i32
    %c0_i32_1 = arith.constant 0 : i32
    return %c0_i32, %c0_i32_0 : i32, i32
  }
  func.func @transform_10(%arg0: i32) -> (i32, i32) {
    %c0_i32 = arith.constant 0 : i32
    %c0_i32_0 = arith.constant 0 : i32
    return %arg0, %c0_i32 : i32, i32
  }
}

</mosaic_0001>

<bundles_post_ra>
// kernel: gnn_critic_forward.1
= control target key start
LH: loop header
LB: loop body
LE: loop exit
PB: predicated region body
PF: predicated region fallthrough
CT: control target
= control target key end

     0   :  { %16 = vsyncpa [#allocation4], 0  ;;  %s1449_s0 = inlined_call_operand.vmem [shape: f32[2,8,12], index: 0, kind: input, shape index: {}]   ;;  %s1450_s1 = inlined_call_operand.hbm [shape: f32[4,16], index: 1, kind: input, shape index: {}]   ;;  %s1451_s2 = inlined_call_operand.hbm [shape: f32[16,16], index: 2, kind: input, shape index: {}]   ;;  %s1452_s3 = inlined_call_operand.vmem [shape: f32[16,4], index: 3, kind: input, shape index: {}]   ;;  %s1453_s4 = inlined_call_operand.vmem [shape: f32[32,32], index: 4, kind: input, shape index: {}]   ;;  %s1454_s5 = inlined_call_operand.vmem [shape: f32[1,32], index: 5, kind: input, shape index: {}]   ;;  %s1455_s6 = inlined_call_operand.hbm [shape: f32[32,32], index: 6, kind: input, shape index: {}]   ;;  %s1456_s7 = inlined_call_operand.vmem [shape: f32[1,32], index: 7, kind: input, shape index: {}]   ;;  %s1457_s8 = inlined_call_operand.vmem [shape: f32[1,32], index: 8, kind: input, shape index: {}]   ;;  %s1458_s9 = inlined_call_operand.<no memory space> [shape: f32[1,1], index: 9, kind: input, shape index: {}]   ;;  %s1459_s10 = inlined_call_operand.vmem [shape: f32[2,128], index: 10, kind: output, shape index: {}]  }
   0x1   :  { %17 = vsyncpa [#allocation6], 0  ;;  %s1248_s13 = smov [#allocation5]   ;;  %s1178_s17 = scalar_lea.hbm %s1451_s2, 256 }
   0x2   :  { %s35_s14 = sshll.u32 %s1248_s13, 4  ;;  %p1179_p0 = scmp.ne.s32.totalorder %s1451_s2, %s1178_s17  ;;  %s36_s14 = int_to_ptr.vmem [resolvable:$true] %s35_s14 }
   0x3   :  { %p1182_p1 = scmp.lt.u32.totalorder %s1178_s17, %s1451_s2 }
   0x5   :  { %p1184_p2 = pnand %p1182_p1, %p1179_p0 }
   0x7   :  { %1187 = shalt.err (!%p1184_p2)
}
   0x8   :  { %s1188_s22 = scalar_lea.vmem %s36_s14, 256  ;;  %p1193_p4 = scmp.lt.s32.totalorder %s36_s14, %s36_s14 }
   0x9   :  { %p1189_p3 = scmp.ne.s32.totalorder %s36_s14, %s1188_s22  ;;  %p1194_p5 = scmp.lt.s32.totalorder %s1188_s22, %s1188_s22 }
   0xb   :  { %p1195_p6 = por %p1194_p5, %p1193_p4 }
   0xd   :  { %p1196_p7 = pnand %p1195_p6, %p1189_p3 }
   0xf   :  { %1199 = shalt.err (!%p1196_p7)
}
  0x10   :  { %s1249_s23 = smov 128   ;;  %s1250_s24 = smov 8  }
  0x11   :  { %41 = dma.hbm_to_vmem [thread:$0]  %s1451_s2, 256, %s36_s14, [#allocation6], %s1249_s23, %s1249_s23, %s1250_s24  }
  0x12   :  { %s1251_s27 = smov [#allocation3]   ;;  %s1252_s29 = smov [#allocation7]  }
  0x13   :  { %s26_s28 = sshll.u32 %s1251_s27, 4  ;;  %s53_s30 = sshll.u32 %s1252_s29, 4  ;;  %s27_s28 = int_to_ptr.vmem [resolvable:$true] %s26_s28  ;;  %s54_s30 = int_to_ptr.vmem [resolvable:$true] %s53_s30 }
  0x14   :  { %s1200_s13 = scalar_lea.hbm %s1450_s1, 64 }
  0x15   :  { %p1201_p8 = scmp.ne.s32.totalorder %s1450_s1, %s1200_s13  ;;  %p1204_p9 = scmp.lt.u32.totalorder %s1200_s13, %s1450_s1 }
  0x17   :  { %p1206_p10 = pnand %p1204_p9, %p1201_p8 }
  0x19   :  { %1209 = shalt.err (!%p1206_p10)
}
  0x1a   :  { %s1210_s2 = scalar_lea.vmem %s27_s28, 64  ;;  %p1215_p12 = scmp.lt.s32.totalorder %s27_s28, %s27_s28 }
  0x1b   :  { %p1211_p11 = scmp.ne.s32.totalorder %s27_s28, %s1210_s2  ;;  %p1216_p13 = scmp.lt.s32.totalorder %s1210_s2, %s1210_s2 }
  0x1d   :  { %p1217_p0 = por %p1216_p13, %p1215_p12 }
  0x1f   :  { %p1218_p1 = pnand %p1217_p0, %p1211_p11 }
  0x21   :  { %1221 = shalt.err (!%p1218_p1)
}
  0x22   :  { %29 = dma.hbm_to_vmem [thread:$0]  %s1450_s1, 64, %s27_s28, [#allocation4]  }
  0x23   :  { %s1222_s22 = scalar_lea.hbm %s1455_s6, 512 }
  0x24   :  { %p1223_p2 = scmp.ne.s32.totalorder %s1455_s6, %s1222_s22  ;;  %p1226_p3 = scmp.lt.u32.totalorder %s1222_s22, %s1455_s6 }
  0x26   :  { %p1228_p4 = pnand %p1226_p3, %p1223_p2 }
  0x28   :  { %1231 = shalt.err (!%p1228_p4)
}
  0x29   :  { %s1232_s11 = scalar_lea.vmem %s54_s30, 512  ;;  %p1237_p6 = scmp.lt.s32.totalorder %s54_s30, %s54_s30 }
  0x2a   :  { %p1233_p5 = scmp.ne.s32.totalorder %s54_s30, %s1232_s11  ;;  %p1238_p7 = scmp.lt.s32.totalorder %s1232_s11, %s1232_s11 }
  0x2c   :  { %p1239_p8 = por %p1238_p7, %p1237_p6 }
  0x2e   :  { %p1240_p9 = pnand %p1239_p8, %p1233_p5 }
  0x30   :  { %1243 = shalt.err (!%p1240_p9)
}
  0x31   :  { %59 = dma.hbm_to_vmem [thread:$0]  %s1455_s6, 512, %s54_s30, [#allocation6], %s1249_s23, %s1249_s23, %s1250_s24  }
  0x32   :  { %1244 = dma.done.wait [#allocation4], 64  }
  0x33   :  { %1245 = vsyncadd [#allocation4], 4294967232 }
  0x34   :  { %1246 = dma.done.wait [#allocation6], 768  }
  0x35   :  { %1247 = vsyncadd [#allocation6], 4294966528  ;;  %vm89_vm0 = vcmask 1043456   ;;  %v1363_v0 = vld [vmem:[%s1449_s0] sm:$0xff]  ;;  %s1253_s15 = smov 120   ;;  %v1369_v2 = vld [vmem:[%s1449_s0 + $0x8] sm:$0xff] }
  0x36   :  { %v77_v1 = vld [vmem:[#allocation3] sm:$0xf]  ;;  %80 = vrot.lane.b32.xlu0 %v1363_v0, %s1253_s15  ;;  %vm84_vm1 = vcmask 31744   ;;  %v1254_v5 = vmov 0.0   ;;  %vm1255_vm2 = vmmov 0   ;;  %vm168_vm3 = vcmask 64512  }
  0x37   :  { %1068 = vmatprep.subr.msk.mxu0 %vm89_vm0, %v77_v1  ;;  %1073 = vmatprep.subr.mxu1 %v1254_v5  ;;  %v315_v8 = vld [vmem:[#allocation5] sm:$0xff]  ;;  %v316_v9 = vld [vmem:[#allocation5 + $0x8] sm:$0xff]  ;;  %vm317_vm4 = vcmask 130048   ;;  %v1256_v32 = vmov 0.0|0.0   ;;  %vm769_vm5 = vcmask 1041409   ;;  %v827_v53 = vld [vmem:[%s1453_s4 + $0x18] sm:$0xff] }
  0x38   :  { %1069 = vmatpush3.msk.msra.mxu0 %vm89_vm0, %v77_v1  ;;  %1075 = vmatprep.mubr.msk.f32.mxu1 %vm1255_vm2, %v1254_v5  ;;  %v1139_v10 = vpack.c.bf16 %v316_v9, %v315_v8  ;;  %v541_v19 = vld [vmem:[%s1452_s3] sm:$0xff]  ;;  %v542_v20 = vld [vmem:[%s1452_s3 + $0x8] sm:$0xff]  ;;  %v826_v52 = vld [vmem:[%s1453_s4 + $0x10] sm:$0xff]  ;;  %s1257_s25 = smov 12   ;;  %s1258_s26 = smov 4   ;;  %vm815_vm6 = vcmask 97280  }
  0x39   :  { %1078 = vmatprep.subr.mxu0 %v1254_v5  ;;  %v1143_v21 = vpack.c.bf16 %v542_v20, %v541_v19  ;;  %v824_v30 = vld [vmem:[%s1453_s4] sm:$0xff]  ;;  %v825_v31 = vld [vmem:[%s1453_s4 + $0x8] sm:$0xff]  ;;  %v1151_v62 = vpack.c.bf16 %v827_v53, %v826_v52  ;;  %s1259_s4 = smov 20   ;;  %s1260_s27 = smov 28   ;;  %vm818_vm7 = vcmask 162816   ;;  %vm820_vm8 = vcmask 195584  }
  0x3a   :  { %82 = vrot.lane.b32.xlu0 %v1369_v2, %s1253_s15  ;;  %v1148_v33 = vpack.c.bf16 %v825_v31, %v824_v30  ;;  %s1261_s29 = smov 16   ;;  %s1262_s11 = smov 24   ;;  %vm822_vm9 = vcmask 228352   ;;  %vm835_vm10 = vcmask 261120   ;;  %v913_v19 = vld [vmem:[#allocation7 + $0x18] sm:$0xff]  ;;  %vm1003_vm11 = vcmask 254976  }
  0x3b   :  { %v1034_v30 = vld [vmem:[%s1457_s8] ss:$0 sm:$0xff] }
  0xa8   :  { %v81_v3 = vpop.permute.xlu0 %80 }
  0xa9   :  { %1070 = vmatprep.mubr.msk.f32.mxu0 %vm84_vm1, %v81_v3 }
  0xac   :  { %v83_v4 = vpop.permute.xlu0 %82 }
  0xad   :  { %1071 = vmatmul.mubr.msk.f32.vlgmr.msra.gmra.mrb[0].mxu0 %vm84_vm1, %v83_v4 }
  0xae   :  { %1080 = vmatprep.mubr.msk.f32.mxu0 %vm1255_vm2, %v1254_v5 }
 0x180   :  { %v1072_v6 = vpop.f32.mrb[0].mxu0 }
 0x181   :  { %v159_v7 = vpop.f32.mrb[1].mxu0  ;;  %1079 = vmatpush3.msra.mxu0 %v1072_v6 }
 0x182   :  { %1074 = vmatpush3.msra.mxu1 %v159_v7  ;;  %1081 = vmatmul.mubr.msk.f32.vlgmr.msra.gmra.mrb[2].mxu0 %vm168_vm3, %v1369_v2 }
 0x183   :  { %1076 = vmatmul.mubr.msk.f32.vlgmr.msra.gmra.mrb[0].mxu1 %vm168_vm3, %v1363_v0  ;;  %1090 = vmatprep.subr.mxu0 %v1254_v5 }
 0x184   :  { %1092 = vmatprep.mubr.msk.f32.mxu0 %vm1255_vm2, %v1254_v5  ;;  %1140 = vmatprep.subr.bf16.mxu1 %v1139_v10 }
 0x185   :  { %1142 = vmatpush3.bf16.msra.mxu1 %v1139_v10 }
 0x186   :  { %1095 = vmatprep.subr.mxu1 %v1254_v5 }
 0x255   :  { %v309_v11 = vpop.f32.mrb[2].mxu0 }
 0x256   :  { %v237_v12 = vpop.f32.mrb[0].mxu1  ;;  %v314_v13 = vmax.f32 %v309_v11, 0.0  ;;  %v1082_v14 = vpop.f32.mrb[3].mxu0 }
 0x257   :  { %v313_v15 = vmax.f32 %v237_v12, 0.0  ;;  %v1077_v16 = vpop.f32.mrb[1].mxu1 }
 0x258   :  { %v911_v16 = vld [vmem:[#allocation7 + $0x8] sm:$0xff] }
 0x259   :  { %1087 = vmatprep.mubr.msk.f32.mxu1 %vm317_vm4, %v313_v15  ;;  %v910_v15 = vld [vmem:[#allocation7] sm:$0xff] }
 0x25a   :  { %1088 = vmatmul.mubr.msk.f32.vlgmr.msra.gmra.mrb[2].mxu1 %vm317_vm4, %v314_v13 }
 0x25b   :  { %1097 = vmatprep.mubr.msk.f32.mxu1 %vm1255_vm2, %v1254_v5 }
 0x32d   :  { %v1089_v17 = vpop.f32.mrb[2].mxu1 }
 0x32e   :  { %v390_v18 = vpop.f32.mrb[3].mxu1  ;;  %1096 = vmatpush3.msra.mxu1 %v1089_v17  ;;  %v912_v17 = vld [vmem:[#allocation7 + $0x10] sm:$0xff] }
 0x32f   :  { %1091 = vmatpush3.msra.mxu0 %v390_v18  ;;  %1098 = vmatmul.mubr.msk.f32.vlgmr.msra.gmra.mrb[4].mxu1 %vm168_vm3, %v1369_v2  ;;  %v1154_v18 = vpack.c.bf16 %v911_v16, %v910_v15  ;;  %v1157_v20 = vpack.c.bf16 %v913_v19, %v912_v17 }
 0x330   :  { %1093 = vmatmul.mubr.msk.f32.vlgmr.msra.gmra.mrb[4].mxu0 %vm168_vm3, %v1363_v0  ;;  %1107 = vmatprep.subr.mxu1 %v1254_v5 }
 0x331   :  { %1109 = vmatprep.mubr.msk.f32.mxu1 %vm1255_vm2, %v1254_v5  ;;  %1144 = vmatprep.subr.bf16.mxu0 %v1143_v21 }
 0x332   :  { %1146 = vmatpush3.bf16.msra.mxu0 %v1143_v21  ;;  %v1030_v21 = vld [vmem:[%s1454_s5] ss:$0 sm:$0xff] }
 0x333   :  { %1112 = vmatprep.subr.mxu0 %v1254_v5 }
 0x402   :  { %v535_v22 = vpop.f32.mrb[4].mxu1 }
 0x403   :  { %v465_v23 = vpop.f32.mrb[4].mxu0  ;;  %v540_v24 = vmax.f32 %v535_v22, 0.0  ;;  %v1099_v25 = vpop.f32.mrb[5].mxu1 }
 0x404   :  { %v539_v26 = vmax.f32 %v465_v23, 0.0  ;;  %v1094_v27 = vpop.f32.mrb[5].mxu0 }
 0x406   :  { %1104 = vmatprep.mubr.msk.f32.mxu0 %vm317_vm4, %v539_v26  ;;  %v1032_v26 = vld [vmem:[%s1456_s7] ss:$0 sm:$0xff] }
 0x407   :  { %1105 = vmatmul.mubr.msk.f32.vlgmr.msra.gmra.mrb[6].mxu0 %vm317_vm4, %v540_v24 }
 0x408   :  { %1114 = vmatprep.mubr.msk.f32.mxu0 %vm1255_vm2, %v1254_v5 }
 0x4da   :  { %v1106_v28 = vpop.f32.mrb[6].mxu0 }
 0x4db   :  { %v615_v29 = vpop.f32.mrb[7].mxu0  ;;  %1113 = vmatpush3.msra.mxu0 %v1106_v28 }
 0x4dc   :  { %1108 = vmatpush3.msra.mxu1 %v615_v29  ;;  %1115 = vmatmul.mubr.msk.f32.vlgmr.msra.gmra.mrb[8].mxu0 %vm168_vm3, %v1369_v2 }
 0x4dd   :  { %1110 = vmatmul.mubr.msk.f32.vlgmr.msra.gmra.mrb[6].mxu1 %vm168_vm3, %v1363_v0  ;;  %1136 = vmatprep.mubr.msk.f32.mxu0 %vm1255_vm2, %v1254_v5 }
 0x4de   :  { %1125 = vmatprep.mubr.msk.f32.mxu1 %vm1255_vm2, %v1254_v5  ;;  %1147 = vmatprep.subr.bf16.mxu1 %v1256_v32 }
 0x4df   :  { %1153 = vmatprep.subr.bf16.mxu0 %v1256_v32  ;;  %1149 = vmatpush3.bf16.msra.mxu1 %v1148_v33 }
 0x4e0   :  { %1150 = vmatprep.subr.bf16.mxu1 %v1256_v32  ;;  %1155 = vmatpush3.bf16.msra.mxu0 %v1154_v18 }
 0x4e1   :  { %1156 = vmatprep.subr.bf16.mxu0 %v1256_v32 }
 0x4e3   :  { %1152 = vmatpush3.bf16.msra.mxu1 %v1151_v62 }
 0x4e4   :  { %1158 = vmatpush3.bf16.msra.mxu0 %v1157_v20 }
 0x5af   :  { %v760_v34 = vpop.f32.mrb[8].mxu0 }
 0x5b0   :  { %v690_v35 = vpop.f32.mrb[6].mxu1  ;;  %v765_v36 = vmax.f32 %v760_v34, 0.0  ;;  %v1116_v37 = vpop.f32.mrb[9].mxu0  ;;  %v1008_v34 = vstv %s1458_s9 }
 0x5b1   :  { %v764_v38 = vmax.f32 %v690_v35, 0.0  ;;  %v1111_v39 = vpop.f32.mrb[7].mxu1 }
 0x5b2   :  { %v784_v40 = vrot.slane %v765_v36, 2  ;;  %v796_v41 = vrot.slane %v765_v36, 4  ;;  %v778_v42 = vrot.slane %v765_v36, 1  ;;  %v808_v43 = vrot.slane %v765_v36, 6 }
 0x5b3   :  { %v783_v44 = vrot.slane %v764_v38, 3  ;;  %v772_v45 = vrot.slane %v764_v38, 1  ;;  %v795_v46 = vrot.slane %v764_v38, 5  ;;  %v777_v47 = vrot.slane %v764_v38, 2 }
 0x5b4   :  { %v807_v48 = vrot.slane %v764_v38, 7  ;;  %v789_v49 = vrot.slane %v764_v38, 4  ;;  %v790_v50 = vrot.slane %v765_v36, 3  ;;  %v801_v51 = vrot.slane %v764_v38, 6 }
 0x5b5   :  { %v785_v54 = vsel %vm769_vm5, %v784_v40, %v783_v44  ;;  %v773_v55 = vsel %vm769_vm5, %v765_v36, %v772_v45  ;;  %v797_v56 = vsel %vm769_vm5, %v796_v41, %v795_v46  ;;  %v779_v57 = vsel %vm769_vm5, %v778_v42, %v777_v47 }
 0x5b6   :  { %786 = vrot.lane.b32.xlu0 %v785_v54, %s1257_s25  ;;  %774 = vrot.lane.b32.xlu1 %v773_v55, %s1258_s26  ;;  %v809_v58 = vsel %vm769_vm5, %v808_v43, %v807_v48  ;;  %v791_v59 = vsel %vm769_vm5, %v790_v50, %v789_v49  ;;  %v802_v60 = vrot.slane %v765_v36, 5  ;;  %v768_v61 = vrot.slane %v765_v36, 7 }
 0x5b8   :  { %v803_v63 = vsel %vm769_vm5, %v802_v60, %v801_v51  ;;  %v770_v0 = vsel %vm769_vm5, %v768_v61, %v764_v38 }
 0x5ba   :  { %798 = vrot.lane.b32.xlu0 %v797_v56, %s1259_s4  ;;  %780 = vrot.lane.b32.xlu1 %v779_v57, %s1250_s24 }
 0x5be   :  { %810 = vrot.lane.b32.xlu0 %v809_v58, %s1260_s27  ;;  %792 = vrot.lane.b32.xlu1 %v791_v59, %s1261_s29 }
 0x5c2   :  { %804 = vrot.lane.b32.xlu1 %v803_v63, %s1262_s11 }
 0x628   :  { %v775_v1 = vpop.permute.xlu1 %774  ;;  %v787_v2 = vpop.permute.xlu0 %786 }
 0x629   :  { %v813_v3 = vsel %vm84_vm1, %v770_v0, %v775_v1 }
 0x62c   :  { %v781_v4 = vpop.permute.xlu1 %780  ;;  %v799_v6 = vpop.permute.xlu0 %798 }
 0x62d   :  { %v814_v5 = vsel %vm168_vm3, %v813_v3, %v781_v4 }
 0x62e   :  { %v816_v8 = vsel %vm815_vm6, %v814_v5, %v787_v2 }
 0x630   :  { %v793_v7 = vpop.permute.xlu1 %792  ;;  %v811_v12 = vpop.permute.xlu0 %810 }
 0x631   :  { %v817_v9 = vsel %vm317_vm4, %v816_v8, %v793_v7 }
 0x632   :  { %v819_v11 = vsel %vm818_vm7, %v817_v9, %v799_v6 }
 0x634   :  { %v805_v10 = vpop.permute.xlu1 %804 }
 0x635   :  { %v821_v13 = vsel %vm820_vm8, %v819_v11, %v805_v10 }
 0x636   :  { %v823_v14 = vsel %vm822_vm9, %v821_v13, %v811_v12 }
 0x637   :  { %1126 = vmatmul.mubr.msk.f32.vlgmr.msra.gmra.mrb[8].mxu1 %vm835_vm10, %v823_v14 }
 0x70a   :  { %v905_v22 = vpop.f32.mrb[8].mxu1 }
 0x70b   :  { %v906_v23 = vadd.f32 %v1030_v21, %v905_v22  ;;  %v1127_v24 = vpop.f32.mrb[9].mxu1 }
 0x70d   :  { %1174 = vtanh.f32 %v906_v23 }
 0x717   :  { %v1175_v25 = vpop.eup %1174 }
 0x718   :  { %1137 = vmatmul.mubr.msk.f32.vlgmr.msra.gmra.mrb[10].mxu0 %vm835_vm10, %v1175_v25 }
 0x7eb   :  { %v990_v27 = vpop.f32.mrb[10].mxu0 }
 0x7ec   :  { %v991_v28 = vadd.f32 %v1032_v26, %v990_v27  ;;  %v1138_v29 = vpop.f32.mrb[11].mxu0 }
 0x7ee   :  { %1176 = vtanh.f32 %v991_v28 }
 0x7f8   :  { %v1177_v31 = vpop.eup %1176 }
 0x7f9   :  { %v1002_v32 = vmul.f32 %v1177_v31, %v1034_v30 }
 0x7fb   :  { %v1004_v33 = vsel %vm1003_vm11, %v1002_v32, 0.0 }
 0x7fc   :  { %1005 = vadd.xlane.f32.xlu1 %v1004_v33 }
 0x889   :  { %v1006_v35 = vpop.xlane.xlu1 %1005 }
 0x88a   :  { %v1009_v36 = vadd.f32 %v1008_v34, %v1006_v35 }
 0x88c   :  { %1010 = vst [vmem:[%s1459_s10] sm:$0x3] %v1009_v36 }
 0x88d   :  { %1015 = vsyncpa [#allocation4], 1 }
 0x88e   :  { %1016 = vsyncpa [#allocation6], 1 }

</bundles_post_ra>
